<compile_context>
chip_gen: v5e
topology: v5e:2x2
jax: 0.10.0
libtpu: 0.0.40
codegen_flags: <defaults>
</compile_context>

<pallas_src>
import functools

import jax
import jax.numpy as jnp
from jax.experimental import pallas as pl
from jax.experimental.pallas import tpu as pltpu

_PALLAS_MIN_BYTES = 1 << 20          # below this, XLA fusion beats kernel overhead
_TARGET_TILE_BYTES = 2 * 1024 * 1024  # ~2 MiB tiles: 4x double-buffer fits all gens


def _apply_activation(s, activation):
    if activation == "relu":
        return jnp.maximum(s, 0)
    if activation == "leaky_relu":
        return jnp.where(s >= 0, s, jnp.asarray(0.01, s.dtype) * s)
    if activation == "none":
        return s
    # TODO(synk): 'prelu' (learnable slope) and 'selu' not wired into the kernel.
    raise NotImplementedError(f"activation {activation!r} not supported in kernel")


def _make_residual_kernel(activation):
    def kernel(x_ref, o_ref):
        x = x_ref[...]
        s = x + x                       # blocks=Identity, shortcut=Identity -> x + residual
        o_ref[...] = _apply_activation(s, activation)
    return kernel


def _reference(x, activation):
    return _apply_activation(x + x, activation)


def _choose_slab(n_elems):
    """Widest lane dim (multiple of 128, <=1024) dividing n_elems; else pad to 128."""
    for lanes in (1024, 512, 256, 128):
        if n_elems % lanes == 0:
            return lanes, n_elems, False
    lanes = 128
    padded = -(-n_elems // lanes) * lanes
    return lanes, padded, True


def residual_block_forward(x, in_channels=None, out_channels=None,
                           activation="relu", force_pallas=False):
    """JAX/Pallas equivalent of ResidualBlock.forward.

    shortcut is nn.Identity() in the reference module, so regardless of
    in/out channels the math is act(x + x).
    """
    orig_shape = x.shape
    orig_dtype = x.dtype
    n_elems = x.size
    itemsize = jnp.dtype(orig_dtype).itemsize

    # Tiny tensors: a single fused XLA elementwise op is faster than kernel launch.
    if not force_pallas and n_elems * itemsize < _PALLAS_MIN_BYTES:
        return _reference(x, activation)

    lanes, padded_elems, needs_pad = _choose_slab(n_elems)
    rows = padded_elems // lanes

    x_flat = x.reshape(-1)
    if needs_pad:
        # Only for ragged element counts; zero tail is harmless (act(0)=0, never read back).
        x_flat = jnp.concatenate(
            [x_flat, jnp.zeros((padded_elems - n_elems,), dtype=orig_dtype)])
    x2d = x_flat.reshape(rows, lanes)

    # dtype-aware sublane quantum (packing: bf16 -> 16 rows, int8/fp8 -> 32).
    sub_q = {4: 8, 2: 16, 1: 32}.get(itemsize, 8)

    if rows < sub_q:
        tile_rows = rows                      # full-dim block (exempt from (8,128) rule)
    else:
        target = max(sub_q,
                     ((_TARGET_TILE_BYTES // (lanes * itemsize)) // sub_q) * sub_q)
        tile_rows = min(target, -(-rows // sub_q) * sub_q)

    grid = (pl.cdiv(rows, tile_rows),)

    out2d = pl.pallas_call(
        _make_residual_kernel(activation),
        out_shape=jax.ShapeDtypeStruct((rows, lanes), orig_dtype),
        grid_spec=pl.GridSpec(
            grid=grid,
            in_specs=[pl.BlockSpec((tile_rows, lanes), lambda i: (i, 0))],
            out_specs=pl.BlockSpec((tile_rows, lanes), lambda i: (i, 0)),
        ),
        compiler_params=pltpu.CompilerParams(
            dimension_semantics=("parallel",),   # shards rows across v7x's 2 TCs
        ),
        input_output_aliases={0: 0},             # reuse the input HBM buffer
        cost_estimate=pl.CostEstimate(
            flops=2 * padded_elems,
            transcendentals=0,
            bytes_accessed=2 * padded_elems * itemsize,
        ),
    )(x2d)

    if needs_pad:
        out = out2d.reshape(-1)[:n_elems].reshape(orig_shape)
    else:
        out = out2d.reshape(orig_shape)
    return out


if __name__ == "__main__":
    key = jax.random.PRNGKey(0)

    # Small NCHW input consistent with the module (in_channels == out_channels == 4).
    B, C, H, W = 2, 4, 16, 16
    x = jax.random.normal(key, (B, C, H, W), dtype=jnp.float32)

    # Force the Pallas path so the kernel itself is exercised on this small test.
    out = residual_block_forward(x, C, C, activation="relu", force_pallas=True)
    out = jax.block_until_ready(out)
    ref = jnp.maximum(x + x, 0)
    assert out.shape == x.shape and out.dtype == x.dtype
    assert jnp.allclose(out, ref, atol=1e-6), "pallas path mismatch vs reference"

    # Auto path (tiny tensor -> fused-XLA fallback) must also match.
    out_auto = jax.block_until_ready(residual_block_forward(x, C, C))
    assert jnp.allclose(out_auto, ref, atol=1e-6), "auto path mismatch vs reference"

    # Ragged + bf16 case exercises the padding branch and 16-row sublane quantum.
    xr = jax.random.normal(jax.random.PRNGKey(1), (2, 3, 5, 7), dtype=jnp.bfloat16)
    outr = jax.block_until_ready(
        residual_block_forward(xr, 3, 3, activation="relu", force_pallas=True))
    refr = jnp.maximum(xr + xr, 0)
    assert outr.shape == xr.shape and outr.dtype == xr.dtype
    assert jnp.allclose(outr.astype(jnp.float32), refr.astype(jnp.float32), atol=1e-2)

    print("KERNEL_OK")
</pallas_src>

<mosaic_0001>
module attributes {stable_mosaic.version = 11 : i64} {
  func.func @kernel(%arg0: i32, %arg1: memref<2x1024xf32, #tpu.memory_space<vmem>>, %arg2: memref<2x1024xf32, #tpu.memory_space<vmem>>) attributes {dimension_semantics = [#tpu.dimension_semantics<parallel>], iteration_bounds = array<i64: 1>, scalar_prefetch = 0 : i64, scratch_operands = 0 : i64, tpu.core_type = #tpu.core_type<tc>, window_params = [{transform_indices = @transform_0, window_bounds = array<i64: 2, 1024>}, {transform_indices = @transform_1, window_bounds = array<i64: 2, 1024>}]} {
    %c0 = arith.constant 0 : index
    %c0_0 = arith.constant 0 : index
    %0 = vector.load %arg1[%c0, %c0_0] : memref<2x1024xf32, #tpu.memory_space<vmem>>, vector<2x1024xf32>
    %1 = arith.addf %0, %0 : vector<2x1024xf32>
    %cst = arith.constant 0.000000e+00 : f32
    %2 = vector.broadcast %cst : f32 to vector<2x1024xf32>
    %3 = arith.maximumf %1, %2 : vector<2x1024xf32>
    %c0_1 = arith.constant 0 : index
    %c0_2 = arith.constant 0 : index
    %4 = vector.load %arg2[%c0_1, %c0_2] : memref<2x1024xf32, #tpu.memory_space<vmem>>, vector<2x1024xf32>
    tpu.vector_store %arg2[%c0_1, %c0_2], %3 {strides = array<i32>} : memref<2x1024xf32, #tpu.memory_space<vmem>>, vector<2x1024xf32>,
    return
  }
  func.func @transform_0(%arg0: i32) -> (i32, i32) {
    %c0_i32 = arith.constant 0 : i32
    %c0_i32_0 = arith.constant 0 : i32
    return %arg0, %c0_i32 : i32, i32
  }
  func.func @transform_1(%arg0: i32) -> (i32, i32) {
    %c0_i32 = arith.constant 0 : i32
    %c0_i32_0 = arith.constant 0 : i32
    return %arg0, %c0_i32 : i32, i32
  }
}

</mosaic_0001>

<bundles_post_ra>
// kernel: tpu_custom_call.1
= control target key start
LH: loop header
LB: loop body
LE: loop exit
PB: predicated region body
PF: predicated region fallthrough
CT: control target
= control target key end

     0   :  { %6 = vsyncpa [#allocation3], 0  ;;  %s120_s0 = inlined_call_operand.hbm [shape: f32[2,1024], index: 0, kind: input, shape index: {}, may-alias: {0,1}]   ;;  %s121_s1 = inlined_call_operand.hbm [shape: f32[2,1024], index: 1, kind: output, shape index: {}, may-alias: {0,1}]  }
   0x1   :  { %7 = vsyncpa [#allocation4], 0  ;;  %s13_s8 = sshll.u32 %s120_s0, 4  ;;  %s102_s9 = smov [#allocation2]   ;;  %s14_s8 = int_to_ptr.hbm [resolvable:$true] %s13_s8 }
   0x2   :  { %s15_s10 = sshll.u32 %s102_s9, 4  ;;  %s16_s10 = int_to_ptr.vmem [resolvable:$true] %s15_s10 }
   0x3   :  { %18 = dma.hbm_to_vmem [thread:$0]  %s14_s8, 256, %s16_s10, [#allocation3]  }
   0x4   :  { %98 = dma.done.wait [#allocation3], 256  }
   0x5   :  { %99 = vsyncadd [#allocation3], 4294967040  ;;  %v23_v0 = vld [vmem:[#allocation2] sm:$0xff]  ;;  %v24_v1 = vld [vmem:[#allocation2 + $0x8] sm:$0xff]  ;;  %s103_s11 = smov [#allocation5]   ;;  %s38_s15 = sshll.u32 %s121_s1, 4  ;;  %s39_s15 = int_to_ptr.hbm [resolvable:$true] %s38_s15 }
   0x6   :  { %v25_v2 = vadd.f32 %v23_v0, %v23_v0  ;;  %v26_v3 = vadd.f32 %v24_v1, %v24_v1  ;;  %s36_s12 = sshll.u32 %s103_s11, 4  ;;  %s37_s12 = int_to_ptr.vmem [resolvable:$true] %s36_s12 }
   0x8   :  { %v27_v4 = vmax.f32 %v25_v2, 0.0  ;;  %v28_v5 = vmax.f32 %v26_v3, 0.0 }
   0xa   :  { %29 = vst [vmem:[#allocation5] sm:$0xff] %v27_v4 }
   0xb   :  { %30 = vst [vmem:[#allocation5 + $0x8] sm:$0xff] %v28_v5 }
   0xc   :  { %41 = dma.vmem_to_hbm [thread:$0]  %s37_s12, 256, %s39_s15, [#allocation4]  }
   0xd   :  { %100 = dma.done.wait [#allocation4], 256  }
   0xe   :  { %101 = vsyncadd [#allocation4], 4294967040 }
   0xf   :  { %46 = vsyncpa [#allocation3], 1 }
  0x10   :  { %47 = vsyncpa [#allocation4], 1 }

</bundles_post_ra>
